<compile_context>
chip_gen: v6e
topology: v6e:2x2x1
jax: 0.10.0
libtpu: 0.0.40
codegen_flags: <defaults>
</compile_context>

<pallas_src>
import functools

import jax
import jax.numpy as jnp
from jax import lax
from jax.experimental import pallas as pl
from jax.experimental.pallas import tpu as pltpu


def _round_up(x, m):
    return -(-x // m) * m


# -----------------------------------------------------------------------------
# Path 1: small vocab -> embedding table resident in VMEM, gather as count matmul
# -----------------------------------------------------------------------------
def _fasttext_resident_kernel(ids_ref, tbl_ref, w_ref, b_ref, out_ref, *,
                              seq_len, v_pad, inv_seq_len):
    """One grid step = one batch tile of `tb` sequences.

    ids_ref : VMEM (tb, S)       int32 token ids
    tbl_ref : VMEM (v_pad, D)    f32 zero-padded embedding table (resident)
    w_ref   : VMEM (D, o_pad)    f32 fc weight
    b_ref   : VMEM (1, o_pad)    f32 fc bias
    out_ref : VMEM (tb, o_pad)   f32
    """
    ids = ids_ref[...]                                          # (tb, S)
    tb = ids.shape[0]
    lane_v = lax.broadcasted_iota(jnp.int32, (tb, v_pad), 1)    # hoisted out of loop

    # Bag-of-words counts: counts[b, v] = #{s : ids[b, s] == v}.  Mean pooling of the
    # embedded sequence is then exactly (counts / S) @ table.
    counts = jnp.zeros((tb, v_pad), jnp.float32)
    for s in range(seq_len):                    # static unroll; pure VPU compare + add
        tok = ids[:, s:s + 1]                   # (tb, 1)
        counts = counts + (lane_v == tok).astype(jnp.float32)

    pooled = jnp.dot(counts * inv_seq_len, tbl_ref[...],
                     preferred_element_type=jnp.float32)        # (tb, D) on the MXU
    out = jnp.dot(pooled, w_ref[...], preferred_element_type=jnp.float32)
    out_ref[...] = out + b_ref[...]


def _forward_resident(ids_bs, emb_table, w_pad, b_pad, *, tb, v_pad, o_pad):
    B, S = ids_bs.shape
    V, D = emb_table.shape
    tbl_pad = jnp.pad(emb_table, ((0, v_pad - V), (0, 0)))

    kernel = functools.partial(_fasttext_resident_kernel,
                               seq_len=S, v_pad=v_pad, inv_seq_len=1.0 / S)

    grid_spec = pltpu.PrefetchScalarGridSpec(
        num_scalar_prefetch=0,
        grid=(B // tb,),                                   # batch tiles only
        in_specs=[
            pl.BlockSpec((tb, S), lambda i: (i, 0)),       # ids tile
            pl.BlockSpec((v_pad, D), lambda i: (0, 0)),    # resident table
            pl.BlockSpec((D, o_pad), lambda i: (0, 0)),    # fc weight
            pl.BlockSpec((1, o_pad), lambda i: (0, 0)),    # fc bias
        ],
        out_specs=pl.BlockSpec((tb, o_pad), lambda i: (i, 0)),
    )

    cost = pl.CostEstimate(
        flops=2 * B * v_pad * D + 2 * B * D * o_pad + B * S * v_pad,
        transcendentals=0,
        bytes_accessed=(v_pad * D * 4 + D * o_pad * 4 + o_pad * 4
                        + B * S * 4 + B * o_pad * 4),
    )

    return pl.pallas_call(
        kernel,
        out_shape=jax.ShapeDtypeStruct((B, o_pad), jnp.float32),
        grid_spec=grid_spec,
        compiler_params=pltpu.CompilerParams(dimension_semantics=("parallel",)),
        cost_estimate=cost,
    )(ids_bs, tbl_pad, w_pad, b_pad)


# -----------------------------------------------------------------------------
# Path 2: large vocab -> HBM table, pipelined per-token row-DMA gather
# -----------------------------------------------------------------------------
def _fasttext_gather_kernel(ids_ref, emb_hbm, w_ref, b_ref, out_ref,
                            emb_buf, sem, acc_ref, *,
                            tb, ts, n_sblk, n_slots, inv_seq_len):
    """One grid step = one batch tile of `tb` sequences.

    ids_ref : SMEM (B, S) int32          scalar-prefetched token ids
    emb_hbm : HBM  (V, D) f32            embedding table, rows DMA-gathered on demand
    w_ref   : VMEM (D, o_pad) f32        fc weight (resident)
    b_ref   : VMEM (1, o_pad) f32        fc bias
    out_ref : VMEM (tb, o_pad) f32
    emb_buf : VMEM (n_slots*ts*tb, D)    gather landing buffer, seq-major within a slot
    sem     : DMA semaphores (n_slots,)  one per buffer slot
    acc_ref : VMEM (tb, D) f32           pooled-sum accumulator
    """
    rows = ts * tb                       # landing rows per seq-block
    b0 = pl.program_id(0) * tb

    def fetch(sblk, slot):
        # Issue one embedding-row DMA per token of seq-block `sblk` into buffer `slot`.
        # Nested loops (no div/mod on the scalar unit); inner seq loop statically
        # unrolled for LLO scheduler visibility.  Landing rows are seq-major:
        # off = slot*rows + s_loc*tb + b_loc.
        s0 = sblk * ts
        base = slot * rows

        @pl.loop(0, tb)
        def _(b_loc):
            for s_loc in range(ts):
                tok = ids_ref[b0 + b_loc, s0 + s_loc]
                pltpu.make_async_copy(
                    emb_hbm.at[pl.ds(tok, 1)],                        # (1, D) table row
                    emb_buf.at[pl.ds(base + s_loc * tb + b_loc, 1)],  # (1, D) landing
                    sem.at[slot],
                ).start()

    # Prime the pipeline n_slots-1 seq-blocks deep; zero the accumulator while those
    # gather DMAs are already in flight.
    for p in range(min(n_slots - 1, n_sblk)):
        fetch(p, p)
    acc_ref[...] = jnp.zeros_like(acc_ref)

    @pl.loop(0, n_sblk)
    def _(sblk):
        slot = sblk % n_slots

        # Issue the next outstanding block's gathers BEFORE waiting on the current
        # slot, so its HBM latency overlaps this block's wait + sum.  The target slot
        # was consumed (and its semaphore fully drained) at iteration sblk-1.
        @pl.when(sblk + (n_slots - 1) < n_sblk)
        def _():
            nxt = sblk + (n_slots - 1)
            fetch(nxt, nxt % n_slots)

        # ONE aggregate wait for all `rows` copies of this slot: DMA semaphores count
        # bytes, so a single descriptor over the whole slot region (rows*D*4 bytes)
        # covers every (1, D) row copy that signalled sem[slot].
        base = pl.multiple_of(slot * rows, rows)
        slot_view = emb_buf.at[pl.ds(base, rows)]
        pltpu.make_async_copy(slot_view, slot_view, sem.at[slot]).wait()

        # Partial pooled sum: seq-major landing rows -> short unrolled VPU adds of
        # (tb, D) chunks; no reshape / sublane regrouping.
        blk_sum = emb_buf[pl.ds(base, tb), :]
        for s_loc in range(1, ts):
            blk_sum = blk_sum + emb_buf[pl.ds(base + s_loc * tb, tb), :]
        acc_ref[...] += blk_sum

    # Finalize: mean over seq, then fc on the MXU + bias; lane-dense o_pad-wide store.
    pooled = acc_ref[...] * inv_seq_len
    out = jnp.dot(pooled, w_ref[...], preferred_element_type=jnp.float32)
    out_ref[...] = out + b_ref[...]


def _forward_gather(ids_bs, emb_table, w_pad, b_pad, *, tb, ts, o_pad):
    B, S = ids_bs.shape
    V, D = emb_table.shape
    assert S % ts == 0, "demo wrapper requires divisible seq tiles"
    assert tb % 8 == 0, "gather path keeps landing rows sublane-aligned"
    n_sblk = S // ts
    n_slots = 3                                  # prefetch up to 2 seq-blocks ahead
    rows = ts * tb

    # Whole-array scalar prefetch: 2-D SMEM pads to [ceil(B/8)*8, ceil(S/128)*128] words.
    smem_bytes = _round_up(B, 8) * _round_up(S, 128) * 4
    assert smem_bytes <= 512 * 1024, "ids too large for whole-array scalar prefetch"
    # TODO(synk): stream per-tile id slices (and handle ragged B/S tails) for large inputs.

    kernel = functools.partial(_fasttext_gather_kernel, tb=tb, ts=ts, n_sblk=n_sblk,
                               n_slots=n_slots, inv_seq_len=1.0 / S)

    grid_spec = pltpu.PrefetchScalarGridSpec(
        num_scalar_prefetch=1,                   # ids -> SMEM, drive the gather DMAs
        grid=(B // tb,),                         # batch tiles; seq reduced in-kernel
        in_specs=[
            pl.BlockSpec(memory_space=pl.ANY),                  # table stays in HBM
            pl.BlockSpec((D, o_pad), lambda i, ids: (0, 0)),    # fc weight (resident)
            pl.BlockSpec((1, o_pad), lambda i, ids: (0, 0)),    # fc bias
        ],
        out_specs=pl.BlockSpec((tb, o_pad), lambda i, ids: (i, 0)),
        scratch_shapes=[
            pltpu.VMEM((n_slots * rows, D), jnp.float32),       # gather landing buffer
            pltpu.SemaphoreType.DMA((n_slots,)),                # one semaphore per slot
            pltpu.VMEM((tb, D), jnp.float32),                   # pooled-sum accumulator
        ],
    )

    itemsize = emb_table.dtype.itemsize
    cost = pl.CostEstimate(
        flops=2 * B * D * o_pad + B * S * D,
        transcendentals=0,
        bytes_accessed=(B * S * D * itemsize                    # each row read once
                        + D * o_pad * 4 + o_pad * 4
                        + B * S * 4 + B * o_pad * 4),
    )

    return pl.pallas_call(
        kernel,
        out_shape=jax.ShapeDtypeStruct((B, o_pad), jnp.float32),
        grid_spec=grid_spec,
        compiler_params=pltpu.CompilerParams(dimension_semantics=("parallel",)),
        cost_estimate=cost,
    )(ids_bs, emb_table, w_pad, b_pad)


# -----------------------------------------------------------------------------
# Public wrapper (matches the PyTorch module's forward semantics)
# -----------------------------------------------------------------------------
def fasttext_forward(x_ids, emb_table, fc_w, fc_b, *, tb=8, ts=8,
                     use_hbm_gather=None):
    """FastText forward.

    x_ids     : (S, B) int  token ids (same layout as the PyTorch module's input)
    emb_table : (V, D) f32  embedding weight
    fc_w      : (D, O) f32  (transpose of torch nn.Linear.weight)
    fc_b      : (O,)   f32
    Returns (B, O) f32.
    """
    S, B = x_ids.shape
    V, D = emb_table.shape
    O = fc_w.shape[1]
    assert B % tb == 0, "demo wrapper requires divisible batch tiles"
    # Keep B//tb a multiple of 2 where possible so ("parallel",) balances both v7x TCs.

    # Zero-pad the fc output dim to a lane-dense multiple of 128; sliced off below.
    o_pad = _round_up(O, 128)
    w_pad = jnp.pad(fc_w, ((0, 0), (0, o_pad - O)))
    b_pad = jnp.pad(fc_b.reshape(1, O), ((0, 0), (0, o_pad - O)))
    ids_bs = jnp.transpose(x_ids).astype(jnp.int32)       # (B, S): long seq axis last

    v_pad = _round_up(V, 128)
    if use_hbm_gather is None:                            # small-table fast path?
        use_hbm_gather = (v_pad * D * 4 > (2 << 20)) or (v_pad > 4096)

    if not use_hbm_gather:
        out_pad = _forward_resident(ids_bs, emb_table, w_pad, b_pad,
                                    tb=tb, v_pad=v_pad, o_pad=o_pad)
    else:
        out_pad = _forward_gather(ids_bs, emb_table, w_pad, b_pad,
                                  tb=tb, ts=ts, o_pad=o_pad)
    return out_pad[:, :O]


if __name__ == "__main__":
    vocab_size, embedding_dim, output_dim = 50, 32, 8
    seq_len, batch = 16, 16

    key = jax.random.PRNGKey(0)
    k_emb, k_w, k_b, k_x = jax.random.split(key, 4)

    # Deterministic synthetic parameters (shapes from the module __init__).
    emb_table = jax.random.normal(k_emb, (vocab_size, embedding_dim), jnp.float32)
    # PyTorch Linear stores weight as (out, in); we keep its transpose (in, out).
    fc_w = jax.random.normal(k_w, (embedding_dim, output_dim), jnp.float32) * 0.1
    fc_b = jax.random.normal(k_b, (output_dim,), jnp.float32) * 0.1
    x_ids = jax.random.randint(k_x, (seq_len, batch), 0, vocab_size, dtype=jnp.int32)

    # Pure-JAX reference: embedding -> permute -> mean over seq -> linear.
    ref_emb = jnp.transpose(jnp.take(emb_table, x_ids, axis=0), (1, 0, 2))  # (B, S, D)
    ref = jnp.mean(ref_emb, axis=1) @ fc_w + fc_b

    # Fast path (auto-selected at these sizes): VMEM-resident table, no per-token DMA.
    out_fast = jax.block_until_ready(
        fasttext_forward(x_ids, emb_table, fc_w, fc_b, tb=8))
    assert out_fast.shape == (batch, output_dim)
    assert jnp.allclose(out_fast, ref, atol=1e-4, rtol=1e-4), \
        float(jnp.max(jnp.abs(out_fast - ref)))

    # Large-vocab path, forced here to also validate the pipelined HBM gather.
    out_gather = jax.block_until_ready(
        fasttext_forward(x_ids, emb_table, fc_w, fc_b, tb=8, ts=8,
                         use_hbm_gather=True))
    assert out_gather.shape == (batch, output_dim)
    assert jnp.allclose(out_gather, ref, atol=1e-4, rtol=1e-4), \
        float(jnp.max(jnp.abs(out_gather - ref)))

    print("KERNEL_OK")
</pallas_src>

<mosaic_0001>
module attributes {stable_mosaic.version = 11 : i64} {
  func.func @_fasttext_resident_kernel(%arg0: i32, %arg1: memref<8x16xi32, #tpu.memory_space<vmem>>, %arg2: memref<128x32xf32, #tpu.memory_space<vmem>>, %arg3: memref<32x128xf32, #tpu.memory_space<vmem>>, %arg4: memref<1x128xf32, #tpu.memory_space<vmem>>, %arg5: memref<8x128xf32, #tpu.memory_space<vmem>>) attributes {dimension_semantics = [#tpu.dimension_semantics<parallel>], iteration_bounds = array<i64: 2>, scalar_prefetch = 0 : i64, scratch_operands = 0 : i64, tpu.core_type = #tpu.core_type<tc>, window_params = [{transform_indices = @transform_0, window_bounds = array<i64: 8, 16>}, {pipeline_mode = #tpu.pipeline_mode<synchronous>, transform_indices = @transform_1, window_bounds = array<i64: 128, 32>}, {pipeline_mode = #tpu.pipeline_mode<synchronous>, transform_indices = @transform_2, window_bounds = array<i64: 32, 128>}, {pipeline_mode = #tpu.pipeline_mode<synchronous>, transform_indices = @transform_3, window_bounds = array<i64: 1, 128>}, {transform_indices = @transform_4, window_bounds = array<i64: 8, 128>}]} {
    %c0 = arith.constant 0 : index
    %c0_0 = arith.constant 0 : index
    %0 = vector.load %arg1[%c0, %c0_0] : memref<8x16xi32, #tpu.memory_space<vmem>>, vector<8x16xi32>
    %1 = tpu.iota {dimensions = array<i32: 1>} : vector<8x128xi32>
    %cst = arith.constant 0.000000e+00 : f32
    %2 = vector.broadcast %cst : f32 to vector<8x128xf32>
    %3 = vector.extract_strided_slice %0 {offsets = [0, 0], sizes = [8, 1], strides = [1, 1]} : vector<8x16xi32> to vector<8x1xi32>
    %4 = vector.broadcast %3 : vector<8x1xi32> to vector<8x128xi32>
    %5 = arith.cmpi eq, %1, %4 : vector<8x128xi32>
    %6 = arith.extui %5 : vector<8x128xi1> to vector<8x128xi32>
    %7 = arith.sitofp %6 : vector<8x128xi32> to vector<8x128xf32>
    %8 = arith.addf %2, %7 : vector<8x128xf32>
    %9 = vector.extract_strided_slice %0 {offsets = [0, 1], sizes = [8, 1], strides = [1, 1]} : vector<8x16xi32> to vector<8x1xi32>
    %10 = vector.broadcast %9 : vector<8x1xi32> to vector<8x128xi32>
    %11 = arith.cmpi eq, %1, %10 : vector<8x128xi32>
    %12 = arith.extui %11 : vector<8x128xi1> to vector<8x128xi32>
    %13 = arith.sitofp %12 : vector<8x128xi32> to vector<8x128xf32>
    %14 = arith.addf %8, %13 : vector<8x128xf32>
    %15 = vector.extract_strided_slice %0 {offsets = [0, 2], sizes = [8, 1], strides = [1, 1]} : vector<8x16xi32> to vector<8x1xi32>
    %16 = vector.broadcast %15 : vector<8x1xi32> to vector<8x128xi32>
    %17 = arith.cmpi eq, %1, %16 : vector<8x128xi32>
    %18 = arith.extui %17 : vector<8x128xi1> to vector<8x128xi32>
    %19 = arith.sitofp %18 : vector<8x128xi32> to vector<8x128xf32>
    %20 = arith.addf %14, %19 : vector<8x128xf32>
    %21 = vector.extract_strided_slice %0 {offsets = [0, 3], sizes = [8, 1], strides = [1, 1]} : vector<8x16xi32> to vector<8x1xi32>
    %22 = vector.broadcast %21 : vector<8x1xi32> to vector<8x128xi32>
    %23 = arith.cmpi eq, %1, %22 : vector<8x128xi32>
    %24 = arith.extui %23 : vector<8x128xi1> to vector<8x128xi32>
    %25 = arith.sitofp %24 : vector<8x128xi32> to vector<8x128xf32>
    %26 = arith.addf %20, %25 : vector<8x128xf32>
    %27 = vector.extract_strided_slice %0 {offsets = [0, 4], sizes = [8, 1], strides = [1, 1]} : vector<8x16xi32> to vector<8x1xi32>
    %28 = vector.broadcast %27 : vector<8x1xi32> to vector<8x128xi32>
    %29 = arith.cmpi eq, %1, %28 : vector<8x128xi32>
    %30 = arith.extui %29 : vector<8x128xi1> to vector<8x128xi32>
    %31 = arith.sitofp %30 : vector<8x128xi32> to vector<8x128xf32>
    %32 = arith.addf %26, %31 : vector<8x128xf32>
    %33 = vector.extract_strided_slice %0 {offsets = [0, 5], sizes = [8, 1], strides = [1, 1]} : vector<8x16xi32> to vector<8x1xi32>
    %34 = vector.broadcast %33 : vector<8x1xi32> to vector<8x128xi32>
    %35 = arith.cmpi eq, %1, %34 : vector<8x128xi32>
    %36 = arith.extui %35 : vector<8x128xi1> to vector<8x128xi32>
    %37 = arith.sitofp %36 : vector<8x128xi32> to vector<8x128xf32>
    %38 = arith.addf %32, %37 : vector<8x128xf32>
    %39 = vector.extract_strided_slice %0 {offsets = [0, 6], sizes = [8, 1], strides = [1, 1]} : vector<8x16xi32> to vector<8x1xi32>
    %40 = vector.broadcast %39 : vector<8x1xi32> to vector<8x128xi32>
    %41 = arith.cmpi eq, %1, %40 : vector<8x128xi32>
    %42 = arith.extui %41 : vector<8x128xi1> to vector<8x128xi32>
    %43 = arith.sitofp %42 : vector<8x128xi32> to vector<8x128xf32>
    %44 = arith.addf %38, %43 : vector<8x128xf32>
    %45 = vector.extract_strided_slice %0 {offsets = [0, 7], sizes = [8, 1], strides = [1, 1]} : vector<8x16xi32> to vector<8x1xi32>
    %46 = vector.broadcast %45 : vector<8x1xi32> to vector<8x128xi32>
    %47 = arith.cmpi eq, %1, %46 : vector<8x128xi32>
    %48 = arith.extui %47 : vector<8x128xi1> to vector<8x128xi32>
    %49 = arith.sitofp %48 : vector<8x128xi32> to vector<8x128xf32>
    %50 = arith.addf %44, %49 : vector<8x128xf32>
    %51 = vector.extract_strided_slice %0 {offsets = [0, 8], sizes = [8, 1], strides = [1, 1]} : vector<8x16xi32> to vector<8x1xi32>
    %52 = vector.broadcast %51 : vector<8x1xi32> to vector<8x128xi32>
    %53 = arith.cmpi eq, %1, %52 : vector<8x128xi32>
    %54 = arith.extui %53 : vector<8x128xi1> to vector<8x128xi32>
    %55 = arith.sitofp %54 : vector<8x128xi32> to vector<8x128xf32>
    %56 = arith.addf %50, %55 : vector<8x128xf32>
    %57 = vector.extract_strided_slice %0 {offsets = [0, 9], sizes = [8, 1], strides = [1, 1]} : vector<8x16xi32> to vector<8x1xi32>
    %58 = vector.broadcast %57 : vector<8x1xi32> to vector<8x128xi32>
    %59 = arith.cmpi eq, %1, %58 : vector<8x128xi32>
    %60 = arith.extui %59 : vector<8x128xi1> to vector<8x128xi32>
    %61 = arith.sitofp %60 : vector<8x128xi32> to vector<8x128xf32>
    %62 = arith.addf %56, %61 : vector<8x128xf32>
    %63 = vector.extract_strided_slice %0 {offsets = [0, 10], sizes = [8, 1], strides = [1, 1]} : vector<8x16xi32> to vector<8x1xi32>
    %64 = vector.broadcast %63 : vector<8x1xi32> to vector<8x128xi32>
    %65 = arith.cmpi eq, %1, %64 : vector<8x128xi32>
    %66 = arith.extui %65 : vector<8x128xi1> to vector<8x128xi32>
    %67 = arith.sitofp %66 : vector<8x128xi32> to vector<8x128xf32>
    %68 = arith.addf %62, %67 : vector<8x128xf32>
    %69 = vector.extract_strided_slice %0 {offsets = [0, 11], sizes = [8, 1], strides = [1, 1]} : vector<8x16xi32> to vector<8x1xi32>
    %70 = vector.broadcast %69 : vector<8x1xi32> to vector<8x128xi32>
    %71 = arith.cmpi eq, %1, %70 : vector<8x128xi32>
    %72 = arith.extui %71 : vector<8x128xi1> to vector<8x128xi32>
    %73 = arith.sitofp %72 : vector<8x128xi32> to vector<8x128xf32>
    %74 = arith.addf %68, %73 : vector<8x128xf32>
    %75 = vector.extract_strided_slice %0 {offsets = [0, 12], sizes = [8, 1], strides = [1, 1]} : vector<8x16xi32> to vector<8x1xi32>
    %76 = vector.broadcast %75 : vector<8x1xi32> to vector<8x128xi32>
    %77 = arith.cmpi eq, %1, %76 : vector<8x128xi32>
    %78 = arith.extui %77 : vector<8x128xi1> to vector<8x128xi32>
    %79 = arith.sitofp %78 : vector<8x128xi32> to vector<8x128xf32>
    %80 = arith.addf %74, %79 : vector<8x128xf32>
    %81 = vector.extract_strided_slice %0 {offsets = [0, 13], sizes = [8, 1], strides = [1, 1]} : vector<8x16xi32> to vector<8x1xi32>
    %82 = vector.broadcast %81 : vector<8x1xi32> to vector<8x128xi32>
    %83 = arith.cmpi eq, %1, %82 : vector<8x128xi32>
    %84 = arith.extui %83 : vector<8x128xi1> to vector<8x128xi32>
    %85 = arith.sitofp %84 : vector<8x128xi32> to vector<8x128xf32>
    %86 = arith.addf %80, %85 : vector<8x128xf32>
    %87 = vector.extract_strided_slice %0 {offsets = [0, 14], sizes = [8, 1], strides = [1, 1]} : vector<8x16xi32> to vector<8x1xi32>
    %88 = vector.broadcast %87 : vector<8x1xi32> to vector<8x128xi32>
    %89 = arith.cmpi eq, %1, %88 : vector<8x128xi32>
    %90 = arith.extui %89 : vector<8x128xi1> to vector<8x128xi32>
    %91 = arith.sitofp %90 : vector<8x128xi32> to vector<8x128xf32>
    %92 = arith.addf %86, %91 : vector<8x128xf32>
    %93 = vector.extract_strided_slice %0 {offsets = [0, 15], sizes = [8, 1], strides = [1, 1]} : vector<8x16xi32> to vector<8x1xi32>
    %94 = vector.broadcast %93 : vector<8x1xi32> to vector<8x128xi32>
    %95 = arith.cmpi eq, %1, %94 : vector<8x128xi32>
    %96 = arith.extui %95 : vector<8x128xi1> to vector<8x128xi32>
    %97 = arith.sitofp %96 : vector<8x128xi32> to vector<8x128xf32>
    %98 = arith.addf %92, %97 : vector<8x128xf32>
    %cst_1 = arith.constant 6.250000e-02 : f32
    %99 = vector.broadcast %cst_1 : f32 to vector<8x128xf32>
    %100 = arith.mulf %98, %99 : vector<8x128xf32>
    %c0_2 = arith.constant 0 : index
    %c0_3 = arith.constant 0 : index
    %101 = vector.load %arg2[%c0_2, %c0_3] : memref<128x32xf32, #tpu.memory_space<vmem>>, vector<128x32xf32>
    %cst_4 = arith.constant dense<0.000000e+00> : vector<8x32xf32>
    %102 = tpu.matmul %100, %101, %cst_4 {dimension_numbers = #tpu.dot_dimension_numbers<[1], [0], [0], [1], [0, 0, 1, 1], [], []>} : vector<8x128xf32>, vector<128x32xf32>, vector<8x32xf32> -> vector<8x32xf32>
    %c0_5 = arith.constant 0 : index
    %c0_6 = arith.constant 0 : index
    %103 = vector.load %arg3[%c0_5, %c0_6] : memref<32x128xf32, #tpu.memory_space<vmem>>, vector<32x128xf32>
    %cst_7 = arith.constant dense<0.000000e+00> : vector<8x128xf32>
    %104 = tpu.matmul %102, %103, %cst_7 {dimension_numbers = #tpu.dot_dimension_numbers<[1], [0], [0], [1], [0, 0, 1, 1], [], []>} : vector<8x32xf32>, vector<32x128xf32>, vector<8x128xf32> -> vector<8x128xf32>
    %c0_8 = arith.constant 0 : index
    %c0_9 = arith.constant 0 : index
    %105 = vector.load %arg4[%c0_8, %c0_9] : memref<1x128xf32, #tpu.memory_space<vmem>>, vector<1x128xf32>
    %106 = vector.broadcast %105 : vector<1x128xf32> to vector<8x128xf32>
    %107 = arith.addf %104, %106 : vector<8x128xf32>
    %c0_10 = arith.constant 0 : index
    %c0_11 = arith.constant 0 : index
    %108 = vector.load %arg5[%c0_10, %c0_11] : memref<8x128xf32, #tpu.memory_space<vmem>>, vector<8x128xf32>
    tpu.vector_store %arg5[%c0_10, %c0_11], %107 {strides = array<i32>} : memref<8x128xf32, #tpu.memory_space<vmem>>, vector<8x128xf32>,
    return
  }
  func.func @transform_0(%arg0: i32) -> (i32, i32) {
    %c0_i32 = arith.constant 0 : i32
    %c0_i32_0 = arith.constant 0 : i32
    return %arg0, %c0_i32 : i32, i32
  }
  func.func @transform_1(%arg0: i32) -> (i32, i32) {
    %c0_i32 = arith.constant 0 : i32
    %c0_i32_0 = arith.constant 0 : i32
    %c0_i32_1 = arith.constant 0 : i32
    return %c0_i32, %c0_i32_0 : i32, i32
  }
  func.func @transform_2(%arg0: i32) -> (i32, i32) {
    %c0_i32 = arith.constant 0 : i32
    %c0_i32_0 = arith.constant 0 : i32
    %c0_i32_1 = arith.constant 0 : i32
    return %c0_i32, %c0_i32_0 : i32, i32
  }
  func.func @transform_3(%arg0: i32) -> (i32, i32) {
    %c0_i32 = arith.constant 0 : i32
    %c0_i32_0 = arith.constant 0 : i32
    %c0_i32_1 = arith.constant 0 : i32
    return %c0_i32, %c0_i32_0 : i32, i32
  }
  func.func @transform_4(%arg0: i32) -> (i32, i32) {
    %c0_i32 = arith.constant 0 : i32
    %c0_i32_0 = arith.constant 0 : i32
    return %arg0, %c0_i32 : i32, i32
  }
}

</mosaic_0001>

<bundles_post_ra>
// kernel: tpu_custom_call.1
= control target key start
LH: loop header
LB: loop body
LE: loop exit
PB: predicated region body
PF: predicated region fallthrough
CT: control target
= control target key end

     0   :  { %9 = vsyncpa [#allocation3], 0  ;;  %s1060_s0 = inlined_call_operand.vmem [shape: s32[16,16], index: 0, kind: input, shape index: {}]   ;;  %s1061_s1 = inlined_call_operand.vmem [shape: f32[128,32], index: 1, kind: input, shape index: {}]   ;;  %s1062_s2 = inlined_call_operand.vmem [shape: f32[32,128], index: 2, kind: input, shape index: {}]   ;;  %s1063_s3 = inlined_call_operand.vmem [shape: f32[1,128], index: 3, kind: input, shape index: {}]   ;;  %s1064_s4 = inlined_call_operand.hbm [shape: f32[16,128], index: 4, kind: output, shape index: {}]  }
   0x1   :  { %11 = vsyncpa [#allocation3 + $0x1], 0  ;;  %s830_s15 = smov 0   ;;  %s832_s16 = smov 0  }
   0x2   :  { %s834_s17 = smov 0   ;;  %s836_s18 = smov 0  }
   0x3 LB: > { %s851_s19 = sadd.s32 4294967295, %s784_s18   ;;  %s554_s20 = sadd.s32 4294967294, %s784_s18   ;;  %s784_s18 = sphi %s836_s18, %s1070_s18   ;;  %s780_s17 = sphi %s834_s17, %s1069_s17   ;;  %s776_s16 = sphi %s832_s16, %s1068_s16   ;;  %s772_s15 = sphi %s830_s15, %s1067_s15  }
   0x4   : > { %s855_s21 = sadd.s32 1, %s784_s18   ;;  %s113_s22 = sadd.s32 1, %s780_s17 }
   0x5   : > { %s110_s23 = ssub.s32 %s784_s18, %s855_s21  ;;  %p123_p0 = scmp.ne.s32.totalorder %s780_s17, %s776_s16 }
   0x6   : > { %p111_p1 = scmp.eq.s32.totalorder %s110_s23, 0  ;;  %p124_p2 = scmp.eq.s32.totalorder %s851_s19, 1 }
   0x7   : > { %p129_p3 = scmp.ne.s32.totalorder %s776_s16, %s772_s15  ;;  %p130_p4 = scmp.eq.s32.totalorder %s554_s20, 1 }
   0x8   : > { %s866_s24 = scalar_select %p111_p1, %s780_s17, %s113_s22  }
   0x9   : > { %p868_p5 = por %p124_p2, %p123_p0  ;;  %p872_p6 = por %p130_p4, %p129_p3 }
   0xa   : > { %p557_p7 = scmp.ge.s32.totalorder %s784_s18, 1  ;;  %p164_p8 = scmp.lt.s32.totalorder %s784_s18, 3 }
   0xc   : > { %p165_p9 = pnand %p557_p7, %p164_p8 }
   0xd   : > { %p189_p10 = scmp.lt.s32.totalorder (!%p165_p9), %s851_s19, 1  ;;  %s186_s12 = sand.u32 (!%p165_p9), 1, %s776_s16  }
   0xe   : > { %168 = sbr.rel (%p165_p9) target bundleno = 600 (0x258), region = 36  ;;  %s558_s13 = sshll.u32 (!%p165_p9), %s186_s12, 3 }
   0xf   : > { %s579_s22 = sshll.u32 (!%p165_p9), %s851_s19, 7  ;;  %s188_s23 = scalar_lea.vmem (!%p165_p9), [#allocation2], %s558_s13 }
  0x10   : > { %s1025_s30 = scalar_lea.hbm (!%p165_p9), %s1064_s4, %s579_s22  ;;  %s804_s7 = smov (!%p165_p9), [#allocation2]  }
  0x13   : > { %v786_v0 = vmov 2   ;;  %v787_v1 = vmov 0   ;;  %s190_s27 = scalar_select %p189_p10, %s851_s19, 1  ;;  %v788_v2 = vmov 0.0   ;;  %v789_v4 = vmov 3   ;;  %v324_v10 = vld [vmem:[%s1061_s1 + $0x78] sm:$0xff] }
  0x14   : > { %709 = vset.pattern.permute.xlu1 %v786_v0  ;;  %707 = vset.pattern.permute.xlu0 %v787_v1  ;;  %v790_v5 = vmov 1   ;;  %v791_v6 = vmov 4   ;;  %v792_v7 = vmov 5   ;;  %v793_v8 = vmov 6   ;;  %v323_v11 = vld [vmem:[%s1061_s1 + $0x70] sm:$0xff]  ;;  %v322_v14 = vld [vmem:[%s1061_s1 + $0x68] sm:$0xff] }
  0x15   : > { %s559_s28 = sshll.u32 %s190_s27, 3  ;;  %604 = vmatprep.subr.mxu0 %v788_v2  ;;  %639 = vmatprep.subr.mxu1 %v788_v2  ;;  %v794_v9 = vmov 8   ;;  %v795_v12 = vmov 7   ;;  %v796_v13 = vmov 11   ;;  %v321_v15 = vld [vmem:[%s1061_s1 + $0x60] sm:$0xff]  ;;  %v797_v16 = vmov 9  }
  0x16   : > { %s192_s5 = scalar_lea.vmem %s1060_s0, %s559_s28  ;;  %605 = vmatpush3.msra.mxu0 %v324_v10  ;;  %v798_v17 = vmov 14   ;;  %v320_v18 = vld [vmem:[%s1061_s1 + $0x58] sm:$0xff]  ;;  %v319_v19 = vld [vmem:[%s1061_s1 + $0x50] sm:$0xff]  ;;  %v799_v20 = vmov 10   ;;  %v318_v21 = vld [vmem:[%s1061_s1 + $0x48] sm:$0xff]  ;;  %v800_v23 = vmov 15   ;;  %v194_v37 = vlaneseq }
  0x17   : > { %v885_v3 = vld [vmem:[%s192_s5] sm:$0xff]  ;;  %606 = vmatprep.subr.mxu0 %v788_v2  ;;  %v316_v24 = vld [vmem:[%s1061_s1 + $0x38] sm:$0xff]  ;;  %v801_v25 = vmov 12   ;;  %v315_v26 = vld [vmem:[%s1061_s1 + $0x30] sm:$0xff]  ;;  %v802_v28 = vmov 13   ;;  %vm803_vm0 = vmmov 0  }
  0x18   : > { %211 = vperm.xlu1 %709, %v885_v3   ;;  %197 = vperm.xlu0 %707, %v885_v3   ;;  %v317_v22 = vld [vmem:[%s1061_s1 + $0x40] sm:$0xff]  ;;  %v314_v27 = vld [vmem:[%s1061_s1 + $0x28] sm:$0xff]  ;;  %v312_v30 = vld [vmem:[%s1061_s1 + $0x18] sm:$0xff]  ;;  %v980_v38 = vand.u32 127, %v194_v37  ;;  %s495_s27 = sshll.u32 %s188_s23, 4  ;;  %s482_s5 = scalar_lea.sflag [#allocation3], %s186_s12  ;;  %s496_s27 = int_to_ptr.vmem [resolvable:$true] %s495_s27 }
  0x19   : > { %607 = vmatpush3.msra.mxu0 %v323_v11  ;;  %v313_v29 = vld [vmem:[%s1061_s1 + $0x20] sm:$0xff]  ;;  %v311_v31 = vld [vmem:[%s1061_s1 + $0x10] sm:$0xff]  ;;  %v310_v32 = vld [vmem:[%s1061_s1 + $0x8] sm:$0xff]  ;;  %636 = vmatprep.mubr.msk.f32.mxu0 %vm803_vm0, %v788_v2  ;;  %s724_s6 = scalar_lea.vmem %s496_s27, 128  ;;  %s728_s19 = sshll.u32 %s804_s7, 4  ;;  %s729_s19 = int_to_ptr.vmem [resolvable:$false] %s728_s19 }
  0x1a   : > { %608 = vmatprep.subr.mxu0 %v788_v2  ;;  %v309_v33 = vld [vmem:[%s1061_s1] sm:$0xff]  ;;  %v398_v34 = vld [vmem:[%s1062_s2 + $0x18] sm:$0xff]  ;;  %v397_v35 = vld [vmem:[%s1062_s2 + $0x10] sm:$0xff]  ;;  %647 = vmatprep.mubr.msk.f32.mxu1 %vm803_vm0, %v788_v2  ;;  %p725_p11 = scmp.ne.s32.totalorder %s496_s27, %s724_s6  ;;  %s730_s8 = scalar_lea.vmem %s729_s19, 256 }
  0x1b   : > { %609 = vmatpush3.msra.mxu0 %v322_v14  ;;  %640 = vmatpush3.msra.mxu1 %v398_v34  ;;  %v396_v36 = vld [vmem:[%s1062_s2 + $0x8] sm:$0xff]  ;;  %p731_p0 = scmp.lt.s32.totalorder %s496_s27, %s729_s19  ;;  %p732_p1 = scmp.lt.s32.totalorder %s730_s8, %s724_s6 }
  0x1c   : > { %710 = vset.pattern.permute.xlu1 %v789_v4  ;;  %708 = vset.pattern.permute.xlu0 %v790_v5  ;;  %p726_p12 = pnand %p725_p11, %p868_p5 }
  0x1d   : > { %218 = vperm.xlu1 %710, %v885_v3   ;;  %204 = vperm.xlu0 %708, %v885_v3   ;;  %p733_p2 = por %p732_p1, %p731_p0 }
  0x1e   : > { %610 = vmatprep.subr.mxu0 %v788_v2  ;;  %641 = vmatprep.subr.mxu1 %v788_v2  ;;  %p727_p13 = pneg %p726_p12 }
  0x1f   : > { %611 = vmatpush3.msra.mxu0 %v321_v15  ;;  %642 = vmatpush3.msra.mxu1 %v397_v35 }
  0x20   : > { %612 = vmatprep.subr.mxu0 %v788_v2  ;;  %643 = vmatprep.subr.mxu1 %v788_v2  ;;  %p734_p3 = pnand %p733_p2, %p727_p13 }
  0x21   : > { %711 = vset.pattern.permute.xlu1 %v791_v6  ;;  %712 = vset.pattern.permute.xlu0 %v792_v7 }
  0x22   : > { %225 = vperm.xlu1 %711, %v885_v3   ;;  %232 = vperm.xlu0 %712, %v885_v3  }
  0x23   : > { %613 = vmatpush3.msra.mxu0 %v320_v18  ;;  %644 = vmatpush3.msra.mxu1 %v396_v36 }
  0x24   : > { %614 = vmatprep.subr.mxu0 %v788_v2  ;;  %645 = vmatprep.subr.mxu1 %v788_v2 }
  0x25   : > { %615 = vmatpush3.msra.mxu0 %v319_v19 }
  0x26   : > { %713 = vset.pattern.permute.xlu1 %v793_v8  ;;  %715 = vset.pattern.permute.xlu0 %v794_v9 }
  0x27   : > { %239 = vperm.xlu1 %713, %v885_v3   ;;  %253 = vperm.xlu0 %715, %v885_v3  }
  0x28   : > { %616 = vmatprep.subr.mxu0 %v788_v2 }
  0x29   : > { %617 = vmatpush3.msra.mxu0 %v318_v21 }
  0x2a   : > { %618 = vmatprep.subr.mxu0 %v788_v2 }
  0x2b   : > { %714 = vset.pattern.permute.xlu1 %v795_v12  ;;  %718 = vset.pattern.permute.xlu0 %v796_v13 }
  0x2c   : > { %246 = vperm.xlu1 %714, %v885_v3   ;;  %274 = vperm.xlu0 %718, %v885_v3  }
  0x2d   : > { %619 = vmatpush3.msra.mxu0 %v317_v22 }
  0x2e   : > { %620 = vmatprep.subr.mxu0 %v788_v2 }
  0x2f   : > { %621 = vmatpush3.msra.mxu0 %v316_v24  ;;  %v395_v24 = vld [vmem:[%s1062_s2] sm:$0xff] }
  0x30   : > { %716 = vset.pattern.permute.xlu1 %v797_v16  ;;  %721 = vset.pattern.permute.xlu0 %v798_v17 }
  0x31   : > { %260 = vperm.xlu1 %716, %v885_v3   ;;  %295 = vperm.xlu0 %721, %v885_v3  }
  0x32   : > { %622 = vmatprep.subr.mxu0 %v788_v2  ;;  %646 = vmatpush3.msra.mxu1 %v395_v24 }
  0x33   : > { %623 = vmatpush3.msra.mxu0 %v315_v26 }
  0x34   : > { %624 = vmatprep.subr.mxu0 %v788_v2 }
  0x35   : > { %717 = vset.pattern.permute.xlu1 %v799_v20  ;;  %723 = vset.pattern.permute.xlu0 %v800_v23 }
  0x36   : > { %267 = vperm.xlu1 %717, %v885_v3   ;;  %625 = vmatpush3.msra.mxu0 %v314_v27  ;;  %v576_v27 = vld [vmem:[%s1063_s3] ss:$0 sm:$0xff] }
  0x37   : > { %626 = vmatprep.subr.mxu0 %v788_v2 }
  0x38   : > { %627 = vmatpush3.msra.mxu0 %v313_v29 }
  0x39   : > { %628 = vmatprep.subr.mxu0 %v788_v2 }
  0x3a   : > { %719 = vset.pattern.permute.xlu1 %v801_v25  ;;  %629 = vmatpush3.msra.mxu0 %v312_v30 }
  0x3b   : > { %281 = vperm.xlu1 %719, %v885_v3   ;;  %630 = vmatprep.subr.mxu0 %v788_v2 }
  0x3c   : > { %631 = vmatpush3.msra.mxu0 %v311_v31 }
  0x3d   : > { %632 = vmatprep.subr.mxu0 %v788_v2 }
  0x3e   : > { %633 = vmatpush3.msra.mxu0 %v310_v32 }
  0x3f   : > { %720 = vset.pattern.permute.xlu1 %v802_v28  ;;  %634 = vmatprep.subr.mxu0 %v788_v2 }
  0x40   : > { %288 = vperm.xlu1 %720, %v885_v3   ;;  %635 = vmatpush3.msra.mxu0 %v309_v33 }
  0x44   : > { %722 = vset.pattern.permute.xlu1 %v800_v23 }
  0x45   : > { %302 = vperm.xlu1 %722, %v885_v3  }
  0x93   : > { %v212_v39 = vpop.permute.xlu1 %211  ;;  %v198_v40 = vpop.permute.xlu0 %197 }
  0x94   : > { %vm199_vm1 = vcmp.eq.s32.totalorder %v980_v38, %v198_v40  ;;  %vm213_vm2 = vcmp.eq.s32.totalorder %v980_v38, %v212_v39 }
  0x95   : > { %v560_v41 = vsel %vm199_vm1, 1.0, %v788_v2  ;;  %v562_v46 = vsel %vm213_vm2, 1.0, %v788_v2  ;;  %vm406_vm1 = vcmask 261120  }
  0x98   : > { %v219_v42 = vpop.permute.xlu1 %218  ;;  %v205_v43 = vpop.permute.xlu0 %204 }
  0x99   : > { %vm206_vm3 = vcmp.eq.s32.totalorder %v980_v38, %v205_v43  ;;  %vm220_vm4 = vcmp.eq.s32.totalorder %v980_v38, %v219_v42 }
  0x9a   : > { %v561_v44 = vsel %vm206_vm3, 1.0, %v788_v2  ;;  %v563_v50 = vsel %vm220_vm4, 1.0, %v788_v2 }
  0x9b   : > { %v209_v45 = vadd.f32 %v561_v44, %v560_v41 }
  0x9d   : > { %v216_v47 = vadd.f32 %v562_v46, %v209_v45  ;;  %v226_v48 = vpop.permute.xlu1 %225  ;;  %v233_v49 = vpop.permute.xlu0 %232 }
  0x9e   : > { %vm227_vm5 = vcmp.eq.s32.totalorder %v980_v38, %v226_v48  ;;  %vm234_vm6 = vcmp.eq.s32.totalorder %v980_v38, %v233_v49 }
  0x9f   : > { %v223_v51 = vadd.f32 %v563_v50, %v216_v47  ;;  %v564_v52 = vsel %vm227_vm5, 1.0, %v788_v2  ;;  %v565_v54 = vsel %vm234_vm6, 1.0, %v788_v2 }
  0xa1   : > { %v230_v53 = vadd.f32 %v564_v52, %v223_v51 }
  0xa2   : > { %v240_v55 = vpop.permute.xlu1 %239  ;;  %v254_v58 = vpop.permute.xlu0 %253 }
  0xa3   : > { %vm241_vm7 = vcmp.eq.s32.totalorder %v980_v38, %v240_v55  ;;  %v237_v56 = vadd.f32 %v565_v54, %v230_v53  ;;  %vm255_vm9 = vcmp.eq.s32.totalorder %v980_v38, %v254_v58 }
  0xa4   : > { %v566_v57 = vsel %vm241_vm7, 1.0, %v788_v2  ;;  %v568_v63 = vsel %vm255_vm9, 1.0, %v788_v2 }
  0xa5   : > { %v244_v60 = vadd.f32 %v566_v57, %v237_v56 }
  0xa7   : > { %v247_v59 = vpop.permute.xlu1 %246  ;;  %v275_v4 = vpop.permute.xlu0 %274 }
  0xa8   : > { %vm248_vm8 = vcmp.eq.s32.totalorder %v980_v38, %v247_v59  ;;  %vm276_vm12 = vcmp.eq.s32.totalorder %v980_v38, %v275_v4 }
  0xa9   : > { %v567_v61 = vsel %vm248_vm8, 1.0, %v788_v2  ;;  %v571_v9 = vsel %vm276_vm12, 1.0, %v788_v2 }
  0xaa   : > { %v251_v62 = vadd.f32 %v567_v61, %v244_v60 }
  0xac   : > { %v261_v0 = vpop.permute.xlu1 %260  ;;  %v258_v1 = vadd.f32 %v568_v63, %v251_v62  ;;  %v296_v11 = vpop.permute.xlu0 %295 }
  0xad   : > { %vm262_vm10 = vcmp.eq.s32.totalorder %v980_v38, %v261_v0  ;;  %vm297_vm14 = vcmp.eq.s32.totalorder %v980_v38, %v296_v11 }
  0xae   : > { %v569_v3 = vsel %vm262_vm10, 1.0, %v788_v2  ;;  %v574_v17 = vsel %vm297_vm14, 1.0, %v788_v2 }
  0xaf   : > { %v265_v6 = vadd.f32 %v569_v3, %v258_v1 }
  0xb1   : > { %v268_v5 = vpop.permute.xlu1 %267 }
  0xb2   : > { %vm269_vm11 = vcmp.eq.s32.totalorder %v980_v38, %v268_v5 }
  0xb3   : > { %v570_v7 = vsel %vm269_vm11, 1.0, %v788_v2 }
  0xb4   : > { %v272_v8 = vadd.f32 %v570_v7, %v265_v6 }
  0xb6   : > { %v282_v10 = vpop.permute.xlu1 %281  ;;  %v279_v12 = vadd.f32 %v571_v9, %v272_v8 }
  0xb7   : > { %vm283_vm13 = vcmp.eq.s32.totalorder %v980_v38, %v282_v10 }
  0xb8   : > { %v572_v13 = vsel %vm283_vm13, 1.0, %v788_v2 }
  0xb9   : > { %v286_v15 = vadd.f32 %v572_v13, %v279_v12 }
  0xbb   : > { %v289_v14 = vpop.permute.xlu1 %288 }
  0xbc   : > { %vm290_vm15 = vcmp.eq.s32.totalorder %v980_v38, %v289_v14 }
  0xbd   : > { %v573_v16 = vsel %vm290_vm15, 1.0, %v788_v2 }
  0xbe   : > { %v293_v18 = vadd.f32 %v573_v16, %v286_v15 }
  0xc0   : > { %v300_v19 = vadd.f32 %v574_v17, %v293_v18  ;;  %v303_v20 = vpop.permute.xlu1 %302 }
  0xc1   : > { %vm304_vm0 = vcmp.eq.s32.totalorder %v980_v38, %v303_v20 }
  0xc2   : > { %v575_v21 = vsel %vm304_vm0, 1.0, %v788_v2 }
  0xc3   : > { %v307_v22 = vadd.f32 %v575_v21, %v300_v19 }
  0xc5   : > { %v308_v23 = vmul.f32 0.0625, %v307_v22 }
  0xc7   : > { %637 = vmatmul.mubr.f32.vlgmr.msra.gmra.mxu0 %v308_v23 }
 0x187   : > { %v391_v25 = vpop.f32.mrf.mxu0 }
 0x188   : > { %648 = vmatmul.mubr.msk.f32.vlgmr.msra.gmra.mxu1 %vm406_vm1, %v391_v25 }
 0x189   : > { %v638_v26 = vpop.f32.mrf.mxu0 }
 0x248   : > { %v476_v2 = vpop.f32.mrf.mxu1 }
 0x249   : > { %v477_v28 = vadd.f32 %v576_v27, %v476_v2 }
 0x24a   : > { %v649_v29 = vpop.f32.mrf.mxu1 }
 0x24b   : > { %480 = vst [vmem:[%s188_s23] sm:$0xff] %v477_v28 }
 0x24c   : > { %737 = shalt.err (!%p734_p3)
}
 0x24d   : > { %s738_s9 = scalar_lea.hbm %s1025_s30, 128  ;;  %s742_s12 = scalar_lea.hbm %s1064_s4, 256 }
 0x24e   : > { %p739_p4 = scmp.ne.s32.totalorder %s1025_s30, %s738_s9  ;;  %p743_p9 = scmp.lt.s32.totalorder %s1025_s30, %s1064_s4 }
 0x24f   : > { %p744_p10 = scmp.lt.s32.totalorder %s742_s12, %s738_s9 }
 0x250   : > { %p740_p7 = pnand %p739_p4, %p868_p5 }
 0x251   : > { %p745_p11 = por %p744_p10, %p743_p9 }
 0x252   : > { %p741_p8 = pneg %p740_p7 }
 0x254   : > { %p746_p12 = pnand %p745_p11, %p741_p8 }
 0x256   : > { %749 = shalt.err (!%p746_p12)
}
 0x257   : > { %650 = dma.vmem_to_hbm [thread:$0]  (%p868_p5), %s496_s27, 128, %s1025_s30, %s482_s5  }
 0x258 PF: > { %p656_p13 = scmp.ge.s32.totalorder %s784_s18, 2  ;;  %s507_s20 = sand.u32 1, %s772_s15  }
 0x259   : > { %s508_s22 = scalar_lea.sflag [#allocation3], %s507_s20 }
 0x25a   : > { %p653_p0 = pnand %p656_p13, %p872_p6 }
 0x25c   : > { %p654_p1 = pneg %p653_p0 }
 0x25e   : > { %767 = dma.done.wait (%p654_p1), %s508_s22, 128  }
 0x25f   : > { %769 = vsyncadd (%p654_p1), %s508_s22, 4294967168  ;;  %p14_p2 = scmp.ge.s32.totalorder %s855_s21, 4   ;;  %s1067_s15 = smov %s776_s16 }
 0x260   : > { %s1068_s16 = smov %s780_s17  ;;  %s1069_s17 = smov %s866_s24 }
 0x261   : > { %s1070_s18 = smov %s855_s21  ;;  %16 = sbr.rel (!%p14_p2) target bundleno = 3 (0x3), region = 71 }
 0x266   :  { %513 = vsyncpa [#allocation3], 1 }
 0x267   :  { %515 = vsyncpa [#allocation3 + $0x1], 1 }

</bundles_post_ra>
